<compile_context>
chip_gen: v6e
topology: v6e:2x2x1
jax: 0.10.0
libtpu: 0.0.40
codegen_flags: <defaults>
</compile_context>

<pallas_src>
import functools

import jax
import jax.numpy as jnp
from jax.experimental import pallas as pl
from jax.experimental.pallas import tpu as pltpu


def _round_up(x, m):
    return (x + m - 1) // m * m


def _pick_batch_tile(B, max_tile):
    """Pick the MXU M-tile (batch tile).

    Goals:
      * as large as possible (grid steps are a serial loop; ~0.35 us each);
      * a divisor of B when possible so the wrapper never pads state or
        slices the output along the batch dim;
      * an even number of steps when >= 2 steps (v7x megacore split).
    """
    max_tile = max(8, _round_up(max_tile, 8))
    if B <= max_tile:
        # Prefer 2 even steps for largish B (v7x 2-TC split), else 1 full block.
        if B >= 1024 and B % 16 == 0:
            return B // 2
        return B
    best_odd = None
    for tile in range(max_tile, 7, -8):
        if B % tile == 0:
            if (B // tile) % 2 == 0:
                return tile
            if best_odd is None:
                best_odd = tile
    if best_odd is not None:
        return best_odd
    return max_tile  # no aligned divisor of B; wrapper pads the last block


def actor_kernel(s_ref, w1_ref, b1_ref, w2_ref, b2_ref, w3_ref, b3_ref,
                 out_ref, *, max_action):
    # Layer 1: state @ W1 + b1, ReLU.  MXU matmul, f32 accumulation.
    w1 = w1_ref[...]
    h = jnp.dot(s_ref[...].astype(w1.dtype), w1,
                preferred_element_type=jnp.float32)
    h = jnp.maximum(h + b1_ref[...], 0.0)
    # Layer 2: h @ W2 + b2, ReLU.
    w2 = w2_ref[...]
    h = jnp.dot(h.astype(w2.dtype), w2, preferred_element_type=jnp.float32)
    h = jnp.maximum(h + b2_ref[...], 0.0)
    # Layer 3: h @ W3 + b3, tanh (EUP, f32), scale by max_action.
    w3 = w3_ref[...]
    a = jnp.dot(h.astype(w3.dtype), w3, preferred_element_type=jnp.float32)
    out_ref[...] = (max_action * jnp.tanh(a + b3_ref[...])).astype(out_ref.dtype)


def actor_reference(state, params, max_action):
    w1, b1, w2, b2, w3, b3 = params
    h = jax.nn.relu(state @ w1 + b1.reshape(1, -1))
    h = jax.nn.relu(h @ w2 + b2.reshape(1, -1))
    return max_action * jnp.tanh(h @ w3 + b3.reshape(1, -1))


def actor_forward(state, params, max_action, *,
                  batch_tile=None, max_batch_tile=2048,
                  weight_dtype=jnp.bfloat16, pad_action_lanes=None,
                  xla_fallback_batch=256, vmem_limit_bytes=None,
                  force_pallas=False):
    """state: [B, state_dim] f32. Returns [B, action_dim] f32.

    batch_tile / max_batch_tile: MXU M-tile (sweep); default picks the
        largest tile <= max_batch_tile that divides B (even step count
        preferred for v7x's 2 TensorCores).
    weight_dtype: matmul-input dtype (default bf16, MXU-native everywhere);
        accumulation and elementwise math stay f32.  Use jnp.float32 for
        full precision.
    pad_action_lanes: zero-pad the 3rd-layer output to 128 lanes for
        unmasked stores (default: on iff action_dim < 128 and B <= 65536).
    """
    w1, b1, w2, b2, w3, b3 = params
    B, state_dim = state.shape
    hidden = w1.shape[1]
    action_dim = w3.shape[1]

    # Small batches: Pallas launch/prologue dominates a ~0.1 us body.
    if B <= xla_fallback_batch and not force_pallas:
        return actor_reference(state, params, max_action)

    # Low-precision matmul inputs (MXU-native); f32 acc/elementwise in-kernel.
    if weight_dtype is not None:
        w1 = w1.astype(weight_dtype)
        w2 = w2.astype(weight_dtype)
        w3 = w3.astype(weight_dtype)
    # Biases stay f32, shaped [1, out] for 2-D broadcast in-kernel.
    b1 = b1.reshape(1, hidden).astype(jnp.float32)
    b2 = b2.reshape(1, hidden).astype(jnp.float32)
    b3 = b3.reshape(1, action_dim).astype(jnp.float32)

    # Lane-dense output: pad W3/b3 columns with zeros so layer-3 stores are
    # full-width vst (biggest measured store-path lever); gated on B because
    # the padded writeback (128 vs 6 lanes) costs extra HBM at very large B.
    if pad_action_lanes is None:
        pad_action_lanes = action_dim < 128 and B <= 65536
    out_cols = action_dim
    if pad_action_lanes:
        out_cols = _round_up(action_dim, 128)
        w3 = jnp.pad(w3, ((0, 0), (0, out_cols - action_dim)))
        b3 = jnp.pad(b3, ((0, 0), (0, out_cols - action_dim)))

    # No K-pad of state/W1: block last dims equal the full array dims.

    if batch_tile is None:
        batch_tile = _pick_batch_tile(B, max_batch_tile)
    batch_tile = min(batch_tile, _round_up(B, 8))
    b_pad = _round_up(B, batch_tile)
    if b_pad != B:
        # Only when no aligned divisor of B exists; zero rows in, extra rows
        # (= max_action * tanh(b3)) sliced off below -> wasted work only.
        state = jnp.pad(state, ((0, b_pad - B), (0, 0)))

    grid = (b_pad // batch_tile,)

    # Weights/biases are tiny (<300 KiB) and have a constant index_map, so
    # they stay resident in VMEM across the whole grid.
    full2 = lambda shape: pl.BlockSpec(shape, lambda i: (0, 0))

    kernel = functools.partial(actor_kernel, max_action=float(max_action))

    out = pl.pallas_call(
        kernel,
        out_shape=jax.ShapeDtypeStruct((b_pad, out_cols), jnp.float32),
        grid_spec=pltpu.PrefetchScalarGridSpec(
            num_scalar_prefetch=0,
            grid=grid,
            in_specs=[
                pl.BlockSpec((batch_tile, state_dim), lambda i: (i, 0)),  # state
                full2((state_dim, hidden)),   # W1
                full2((1, hidden)),           # b1
                full2((hidden, hidden)),      # W2
                full2((1, hidden)),           # b2
                full2((hidden, out_cols)),    # W3 (lane-padded)
                full2((1, out_cols)),         # b3 (lane-padded)
            ],
            out_specs=pl.BlockSpec((batch_tile, out_cols), lambda i: (i, 0)),
        ),
        compiler_params=pltpu.CompilerParams(
            dimension_semantics=("parallel",),
            vmem_limit_bytes=vmem_limit_bytes),
    )(state, w1, b1, w2, b2, w3, b3)

    if b_pad != B or out_cols != action_dim:
        out = out[:B, :action_dim]
    return out


def init_actor_params(key, state_dim, action_dim, hidden=256):
    """Deterministic init mimicking PyTorch nn.Linear default U(-1/sqrt(fan_in), +)."""
    ks = jax.random.split(key, 6)

    def linear(kw, kb, fan_in, fan_out):
        bound = 1.0 / jnp.sqrt(jnp.float32(fan_in))
        w = jax.random.uniform(kw, (fan_in, fan_out), jnp.float32, -bound, bound)
        b = jax.random.uniform(kb, (1, fan_out), jnp.float32, -bound, bound)
        return w, b

    w1, b1 = linear(ks[0], ks[1], state_dim, hidden)
    w2, b2 = linear(ks[2], ks[3], hidden, hidden)
    w3, b3 = linear(ks[4], ks[5], hidden, action_dim)
    return (w1, b1, w2, b2, w3, b3)


if __name__ == "__main__":
    key = jax.random.PRNGKey(0)
    k1, k2, k3, kp = jax.random.split(key, 4)

    state_dim = 17      # e.g. HalfCheetah obs dim
    action_dim = 6
    max_action = 1.0
    params = init_actor_params(kp, state_dim, action_dim)

    # 1) Small batch forced through the kernel with f32 weights: single full
    #    block, no padding anywhere except the 128-lane output; tight check.
    s8 = jax.random.normal(k1, (8, state_dim), jnp.float32)
    o8 = jax.block_until_ready(
        actor_forward(s8, params, max_action,
                      weight_dtype=jnp.float32, force_pallas=True))
    r8 = actor_reference(s8, params, max_action)
    assert o8.shape == (8, action_dim)
    assert jnp.allclose(o8, r8, atol=1e-4, rtol=1e-4), \
        "small-batch f32 mismatch vs reference"

    # 2) Non-divisible batch with an explicit small tile: exercises the
    #    batch-pad, multi-step grid, and lane-dense output slice paths.
    s300 = jax.random.normal(k2, (300, state_dim), jnp.float32)
    o300 = jax.block_until_ready(
        actor_forward(s300, params, max_action, batch_tile=128,
                      weight_dtype=jnp.float32, force_pallas=True))
    r300 = actor_reference(s300, params, max_action)
    assert o300.shape == (300, action_dim)
    assert jnp.allclose(o300, r300, atol=1e-4, rtol=1e-4), \
        "padded-batch f32 mismatch vs reference"

    # 3) Default path at a larger batch: bf16 MXU inputs, f32 accumulation and
    #    elementwise math, single 512-row block (no pads along batch).
    s512 = jax.random.normal(k3, (512, state_dim), jnp.float32)
    o512 = jax.block_until_ready(actor_forward(s512, params, max_action))
    r512 = actor_reference(s512, params, max_action)
    assert o512.shape == (512, action_dim)
    assert jnp.allclose(o512, r512, atol=5e-2, rtol=5e-2), \
        "default bf16 path mismatch vs reference"

    print("KERNEL_OK")
</pallas_src>

<mosaic_0001>
module attributes {stable_mosaic.version = 11 : i64} {
  func.func @actor_kernel(%arg0: i32, %arg1: memref<8x17xf32, #tpu.memory_space<vmem>>, %arg2: memref<17x256xf32, #tpu.memory_space<vmem>>, %arg3: memref<1x256xf32, #tpu.memory_space<vmem>>, %arg4: memref<256x256xf32, #tpu.memory_space<vmem>>, %arg5: memref<1x256xf32, #tpu.memory_space<vmem>>, %arg6: memref<256x128xf32, #tpu.memory_space<vmem>>, %arg7: memref<1x128xf32, #tpu.memory_space<vmem>>, %arg8: memref<8x128xf32, #tpu.memory_space<vmem>>) attributes {dimension_semantics = [#tpu.dimension_semantics<parallel>], iteration_bounds = array<i64: 1>, scalar_prefetch = 0 : i64, scratch_operands = 0 : i64, tpu.core_type = #tpu.core_type<tc>, window_params = [{transform_indices = @transform_0, window_bounds = array<i64: 8, 17>}, {pipeline_mode = #tpu.pipeline_mode<synchronous>, transform_indices = @transform_1, window_bounds = array<i64: 17, 256>}, {pipeline_mode = #tpu.pipeline_mode<synchronous>, transform_indices = @transform_2, window_bounds = array<i64: 1, 256>}, {pipeline_mode = #tpu.pipeline_mode<synchronous>, transform_indices = @transform_3, window_bounds = array<i64: 256, 256>}, {pipeline_mode = #tpu.pipeline_mode<synchronous>, transform_indices = @transform_4, window_bounds = array<i64: 1, 256>}, {pipeline_mode = #tpu.pipeline_mode<synchronous>, transform_indices = @transform_5, window_bounds = array<i64: 256, 128>}, {pipeline_mode = #tpu.pipeline_mode<synchronous>, transform_indices = @transform_6, window_bounds = array<i64: 1, 128>}, {transform_indices = @transform_7, window_bounds = array<i64: 8, 128>}]} {
    %c0 = arith.constant 0 : index
    %c0_0 = arith.constant 0 : index
    %0 = vector.load %arg2[%c0, %c0_0] : memref<17x256xf32, #tpu.memory_space<vmem>>, vector<17x256xf32>
    %c0_1 = arith.constant 0 : index
    %c0_2 = arith.constant 0 : index
    %1 = vector.load %arg1[%c0_1, %c0_2] : memref<8x17xf32, #tpu.memory_space<vmem>>, vector<8x17xf32>
    %cst = arith.constant dense<0.000000e+00> : vector<8x256xf32>
    %2 = tpu.matmul %1, %0, %cst {dimension_numbers = #tpu.dot_dimension_numbers<[1], [0], [0], [1], [0, 0, 1, 1], [], []>} : vector<8x17xf32>, vector<17x256xf32>, vector<8x256xf32> -> vector<8x256xf32>
    %c0_3 = arith.constant 0 : index
    %c0_4 = arith.constant 0 : index
    %3 = vector.load %arg3[%c0_3, %c0_4] : memref<1x256xf32, #tpu.memory_space<vmem>>, vector<1x256xf32>
    %4 = vector.broadcast %3 : vector<1x256xf32> to vector<8x256xf32>
    %5 = arith.addf %2, %4 : vector<8x256xf32>
    %cst_5 = arith.constant 0.000000e+00 : f32
    %6 = vector.broadcast %cst_5 : f32 to vector<8x256xf32>
    %7 = arith.maximumf %5, %6 : vector<8x256xf32>
    %c0_6 = arith.constant 0 : index
    %c0_7 = arith.constant 0 : index
    %8 = vector.load %arg4[%c0_6, %c0_7] : memref<256x256xf32, #tpu.memory_space<vmem>>, vector<256x256xf32>
    %cst_8 = arith.constant dense<0.000000e+00> : vector<8x256xf32>
    %9 = tpu.matmul %7, %8, %cst_8 {dimension_numbers = #tpu.dot_dimension_numbers<[1], [0], [0], [1], [0, 0, 1, 1], [], []>} : vector<8x256xf32>, vector<256x256xf32>, vector<8x256xf32> -> vector<8x256xf32>
    %c0_9 = arith.constant 0 : index
    %c0_10 = arith.constant 0 : index
    %10 = vector.load %arg5[%c0_9, %c0_10] : memref<1x256xf32, #tpu.memory_space<vmem>>, vector<1x256xf32>
    %11 = vector.broadcast %10 : vector<1x256xf32> to vector<8x256xf32>
    %12 = arith.addf %9, %11 : vector<8x256xf32>
    %cst_11 = arith.constant 0.000000e+00 : f32
    %13 = vector.broadcast %cst_11 : f32 to vector<8x256xf32>
    %14 = arith.maximumf %12, %13 : vector<8x256xf32>
    %c0_12 = arith.constant 0 : index
    %c0_13 = arith.constant 0 : index
    %15 = vector.load %arg6[%c0_12, %c0_13] : memref<256x128xf32, #tpu.memory_space<vmem>>, vector<256x128xf32>
    %cst_14 = arith.constant dense<0.000000e+00> : vector<8x128xf32>
    %16 = tpu.matmul %14, %15, %cst_14 {dimension_numbers = #tpu.dot_dimension_numbers<[1], [0], [0], [1], [0, 0, 1, 1], [], []>} : vector<8x256xf32>, vector<256x128xf32>, vector<8x128xf32> -> vector<8x128xf32>
    %c0_15 = arith.constant 0 : index
    %c0_16 = arith.constant 0 : index
    %17 = vector.load %arg7[%c0_15, %c0_16] : memref<1x128xf32, #tpu.memory_space<vmem>>, vector<1x128xf32>
    %18 = vector.broadcast %17 : vector<1x128xf32> to vector<8x128xf32>
    %19 = arith.addf %16, %18 : vector<8x128xf32>
    %20 = math.tanh %19 : vector<8x128xf32>
    %cst_17 = arith.constant 1.000000e+00 : f32
    %21 = vector.broadcast %cst_17 : f32 to vector<8x128xf32>
    %22 = arith.mulf %21, %20 : vector<8x128xf32>
    %c0_18 = arith.constant 0 : index
    %c0_19 = arith.constant 0 : index
    %23 = vector.load %arg8[%c0_18, %c0_19] : memref<8x128xf32, #tpu.memory_space<vmem>>, vector<8x128xf32>
    tpu.vector_store %arg8[%c0_18, %c0_19], %22 {strides = array<i32>} : memref<8x128xf32, #tpu.memory_space<vmem>>, vector<8x128xf32>,
    return
  }
  func.func @transform_0(%arg0: i32) -> (i32, i32) {
    %c0_i32 = arith.constant 0 : i32
    %c0_i32_0 = arith.constant 0 : i32
    return %arg0, %c0_i32 : i32, i32
  }
  func.func @transform_1(%arg0: i32) -> (i32, i32) {
    %c0_i32 = arith.constant 0 : i32
    %c0_i32_0 = arith.constant 0 : i32
    %c0_i32_1 = arith.constant 0 : i32
    return %c0_i32, %c0_i32_0 : i32, i32
  }
  func.func @transform_2(%arg0: i32) -> (i32, i32) {
    %c0_i32 = arith.constant 0 : i32
    %c0_i32_0 = arith.constant 0 : i32
    %c0_i32_1 = arith.constant 0 : i32
    return %c0_i32, %c0_i32_0 : i32, i32
  }
  func.func @transform_3(%arg0: i32) -> (i32, i32) {
    %c0_i32 = arith.constant 0 : i32
    %c0_i32_0 = arith.constant 0 : i32
    %c0_i32_1 = arith.constant 0 : i32
    return %c0_i32, %c0_i32_0 : i32, i32
  }
  func.func @transform_4(%arg0: i32) -> (i32, i32) {
    %c0_i32 = arith.constant 0 : i32
    %c0_i32_0 = arith.constant 0 : i32
    %c0_i32_1 = arith.constant 0 : i32
    return %c0_i32, %c0_i32_0 : i32, i32
  }
  func.func @transform_5(%arg0: i32) -> (i32, i32) {
    %c0_i32 = arith.constant 0 : i32
    %c0_i32_0 = arith.constant 0 : i32
    %c0_i32_1 = arith.constant 0 : i32
    return %c0_i32, %c0_i32_0 : i32, i32
  }
  func.func @transform_6(%arg0: i32) -> (i32, i32) {
    %c0_i32 = arith.constant 0 : i32
    %c0_i32_0 = arith.constant 0 : i32
    %c0_i32_1 = arith.constant 0 : i32
    return %c0_i32, %c0_i32_0 : i32, i32
  }
  func.func @transform_7(%arg0: i32) -> (i32, i32) {
    %c0_i32 = arith.constant 0 : i32
    %c0_i32_0 = arith.constant 0 : i32
    return %arg0, %c0_i32 : i32, i32
  }
}

</mosaic_0001>

<bundles_post_ra>
// kernel: tpu_custom_call.1
= control target key start
LH: loop header
LB: loop body
LE: loop exit
PB: predicated region body
PF: predicated region fallthrough
CT: control target
= control target key end

     0   :  { %12 = vsyncpa [#allocation3], 0  ;;  %s693_s0 = inlined_call_operand.hbm [shape: f32[8,17], index: 0, kind: input, shape index: {}]   ;;  %s694_s1 = inlined_call_operand.hbm [shape: f32[17,256], index: 1, kind: input, shape index: {}]   ;;  %s695_s2 = inlined_call_operand.vmem [shape: f32[1,256], index: 2, kind: input, shape index: {}]   ;;  %s696_s3 = inlined_call_operand.hbm [shape: f32[256,256], index: 3, kind: input, shape index: {}]   ;;  %s697_s4 = inlined_call_operand.vmem [shape: f32[1,256], index: 4, kind: input, shape index: {}]   ;;  %s698_s5 = inlined_call_operand.hbm [shape: f32[256,128], index: 5, kind: input, shape index: {}]   ;;  %s699_s6 = inlined_call_operand.vmem [shape: f32[1,128], index: 6, kind: input, shape index: {}]   ;;  %s700_s7 = inlined_call_operand.hbm [shape: f32[8,128], index: 7, kind: output, shape index: {}]  }
   0x1   :  { %13 = vsyncpa [#allocation6], 0 }
   0x2   :  { %14 = vsyncpa [#allocation9], 0 }
   0x3   :  { %15 = vsyncpa [#allocation4], 0  ;;  %s619_s24 = smov [#allocation5]  }
   0x4   :  { %s31_s25 = sshll.u32 %s619_s24, 4  ;;  %s32_s25 = int_to_ptr.vmem [resolvable:$true] %s31_s25 }
   0x5   :  { %s519_s26 = scalar_lea.vmem %s32_s25, 768  ;;  %p524_p1 = scmp.lt.s32.totalorder %s32_s25, %s32_s25 }
   0x6   :  { %p520_p0 = scmp.ne.s32.totalorder %s32_s25, %s519_s26  ;;  %p525_p2 = scmp.lt.s32.totalorder %s519_s26, %s519_s26 }
   0x8   :  { %p526_p3 = por %p525_p2, %p524_p1 }
   0xa   :  { %p527_p4 = pnand %p526_p3, %p520_p0 }
   0xc   :  { %530 = shalt.err (!%p527_p4)
}
   0xd   :  { %s620_s27 = smov 256   ;;  %s621_s28 = smov 16  }
   0xe   :  { %37 = dma.hbm_to_vmem [thread:$0]  %s694_s1, 768, %s32_s25, [#allocation6], %s620_s27, %s620_s27, %s621_s28  }
   0xf   :  { %s622_s8 = smov [#allocation2]   ;;  %s623_s10 = smov [#allocation7]  }
  0x10   :  { %s22_s9 = sshll.u32 %s622_s8, 4  ;;  %s45_s11 = sshll.u32 %s623_s10, 4  ;;  %s23_s9 = int_to_ptr.vmem [resolvable:$true] %s22_s9  ;;  %s46_s11 = int_to_ptr.vmem [resolvable:$true] %s45_s11 }
  0x11   :  { %s539_s12 = scalar_lea.vmem %s23_s9, 128  ;;  %p544_p6 = scmp.lt.s32.totalorder %s23_s9, %s23_s9 }
  0x12   :  { %p540_p5 = scmp.ne.s32.totalorder %s23_s9, %s539_s12  ;;  %p545_p7 = scmp.lt.s32.totalorder %s539_s12, %s539_s12 }
  0x14   :  { %p546_p8 = por %p545_p7, %p544_p6 }
  0x16   :  { %p547_p9 = pnand %p546_p8, %p540_p5 }
  0x18   :  { %550 = shalt.err (!%p547_p9)
}
  0x19   :  { %25 = dma.hbm_to_vmem [thread:$0]  %s693_s0, 128, %s23_s9, [#allocation3]  }
  0x1a   :  { %s559_s15 = scalar_lea.vmem %s46_s11, 8192  ;;  %p564_p11 = scmp.lt.s32.totalorder %s46_s11, %s46_s11 }
  0x1b   :  { %p560_p10 = scmp.ne.s32.totalorder %s46_s11, %s559_s15  ;;  %p565_p12 = scmp.lt.s32.totalorder %s559_s15, %s559_s15 }
  0x1d   :  { %p566_p13 = por %p565_p12, %p564_p11 }
  0x1f   :  { %p567_p0 = pnand %p566_p13, %p560_p10 }
  0x21   :  { %570 = shalt.err (!%p567_p0)
}
  0x22   :  { %51 = dma.hbm_to_vmem [thread:$0]  %s696_s3, 8192, %s46_s11, [#allocation6], %s620_s27, %s620_s27, %s621_s28  }
  0x23   :  { %s624_s17 = smov [#allocation8]  }
  0x24   :  { %s59_s18 = sshll.u32 %s624_s17, 4  ;;  %s60_s18 = int_to_ptr.vmem [resolvable:$true] %s59_s18 }
  0x25   :  { %s579_s19 = scalar_lea.vmem %s60_s18, 4096  ;;  %p584_p2 = scmp.lt.s32.totalorder %s60_s18, %s60_s18 }
  0x26   :  { %p580_p1 = scmp.ne.s32.totalorder %s60_s18, %s579_s19  ;;  %p585_p3 = scmp.lt.s32.totalorder %s579_s19, %s579_s19 }
  0x28   :  { %p586_p4 = por %p585_p3, %p584_p2 }
  0x2a   :  { %p587_p5 = pnand %p586_p4, %p580_p1 }
  0x2c   :  { %590 = shalt.err (!%p587_p5)
}
  0x2d   :  { %s625_s0 = smov 128   ;;  %s626_s20 = smov 8  }
  0x2e   :  { %65 = dma.hbm_to_vmem [thread:$0]  %s698_s5, 4096, %s60_s18, [#allocation9], %s625_s0, %s625_s0, %s626_s20  }
  0x2f   :  { %611 = dma.done.wait [#allocation3], 128  }
  0x30   :  { %612 = vsyncadd [#allocation3], 4294967168 }
  0x31   :  { %613 = dma.done.wait [#allocation6], 8960  }
  0x32   :  { %614 = vsyncadd [#allocation6], 4294958336 }
  0x33   :  { %615 = dma.done.wait [#allocation9], 4096  }
  0x34   :  { %616 = vsyncadd [#allocation9], 4294963200  ;;  %v627_v0 = vmov 0.0   ;;  %vm103_vm0 = vcmask 1040384   ;;  %v85_v1 = vld [vmem:[#allocation5 + $0x28] sm:$0x1] }
  0x35   :  { %174 = vmatprep.mubr.f32.mxu0 %v627_v0  ;;  %v84_v2 = vld [vmem:[#allocation5 + $0x20] sm:$0x1]  ;;  %v83_v3 = vld [vmem:[#allocation5 + $0x18] sm:$0xff]  ;;  %460 = vmatprep.subr.msk.mxu0 %vm103_vm0, %v85_v1  ;;  %v82_v4 = vld [vmem:[#allocation5 + $0x10] sm:$0xff]  ;;  %vm99_vm1 = vcmask 138240  }
  0x36   :  { %461 = vmatpush1.msk.msra.mxu0 %vm103_vm0, %v84_v2  ;;  %v81_v5 = vld [vmem:[#allocation5 + $0x8] sm:$0xff]  ;;  %v213_v7 = vld [vmem:[#allocation7 + $0xf0] sm:$0xff]  ;;  %v212_v9 = vld [vmem:[#allocation7 + $0xe8] sm:$0xff] }
  0x37   :  { %v214_v6 = vld [vmem:[#allocation7 + $0xf8] sm:$0xff]  ;;  %138 = vmatprep.subr.mxu0 %v83_v3  ;;  %v80_v8 = vld [vmem:[#allocation5] sm:$0xff]  ;;  %v211_v10 = vld [vmem:[#allocation7 + $0xe0] sm:$0xff] }
  0x38   :  { %259 = vmatprep.subr.mxu1 %v214_v6  ;;  %139 = vmatpush1.msra.mxu0 %v82_v4  ;;  %v86_v11 = vld [vmem:[#allocation2] sm:$0xff]  ;;  %v210_v12 = vld [vmem:[#allocation7 + $0xd8] sm:$0xff]  ;;  %v209_v13 = vld [vmem:[#allocation7 + $0xd0] sm:$0xff] }
  0x39   :  { %260 = vmatpush1.msra.mxu1 %v213_v7  ;;  %140 = vmatprep.subr.mxu0 %v81_v5  ;;  %v208_v14 = vld [vmem:[#allocation7 + $0xc8] sm:$0xff]  ;;  %v207_v15 = vld [vmem:[#allocation7 + $0xc0] sm:$0xff]  ;;  %v206_v16 = vld [vmem:[#allocation7 + $0xb8] sm:$0xff] }
  0x3a   :  { %261 = vmatprep.subr.mxu1 %v212_v9  ;;  %141 = vmatpush1.msra.mxu0 %v80_v8  ;;  %v205_v17 = vld [vmem:[#allocation7 + $0xb0] sm:$0xff]  ;;  %v204_v18 = vld [vmem:[#allocation7 + $0xa8] sm:$0xff]  ;;  %v203_v19 = vld [vmem:[#allocation7 + $0xa0] sm:$0xff] }
  0x3b   :  { %262 = vmatpush1.msra.mxu1 %v211_v10  ;;  %462 = vmatmul.mubr.msk.f32.vlgmr.msra.gmra.mxu0 %vm99_vm1, %v86_v11  ;;  %v202_v20 = vld [vmem:[#allocation7 + $0x98] sm:$0xff]  ;;  %v201_v21 = vld [vmem:[#allocation7 + $0x90] sm:$0xff]  ;;  %v200_v22 = vld [vmem:[#allocation7 + $0x88] sm:$0xff] }
  0x3c   :  { %263 = vmatprep.subr.mxu1 %v210_v12  ;;  %v199_v23 = vld [vmem:[#allocation7 + $0x80] sm:$0xff]  ;;  %v198_v24 = vld [vmem:[#allocation7 + $0x78] sm:$0xff]  ;;  %v197_v25 = vld [vmem:[#allocation7 + $0x70] sm:$0xff] }
  0x3d   :  { %264 = vmatpush1.msra.mxu1 %v209_v13  ;;  %v196_v26 = vld [vmem:[#allocation7 + $0x68] sm:$0xff]  ;;  %v195_v27 = vld [vmem:[#allocation7 + $0x60] sm:$0xff]  ;;  %v194_v28 = vld [vmem:[#allocation7 + $0x58] sm:$0xff] }
  0x3e   :  { %265 = vmatprep.subr.mxu1 %v208_v14  ;;  %v193_v29 = vld [vmem:[#allocation7 + $0x50] sm:$0xff]  ;;  %v192_v30 = vld [vmem:[#allocation7 + $0x48] sm:$0xff]  ;;  %v191_v31 = vld [vmem:[#allocation7 + $0x40] sm:$0xff] }
  0x3f   :  { %266 = vmatpush1.msra.mxu1 %v207_v15  ;;  %v190_v32 = vld [vmem:[#allocation7 + $0x38] sm:$0xff]  ;;  %v189_v33 = vld [vmem:[#allocation7 + $0x30] sm:$0xff]  ;;  %v188_v34 = vld [vmem:[#allocation7 + $0x28] sm:$0xff] }
  0x40   :  { %267 = vmatprep.subr.mxu1 %v206_v16  ;;  %v187_v35 = vld [vmem:[#allocation7 + $0x20] sm:$0xff]  ;;  %v186_v36 = vld [vmem:[#allocation7 + $0x18] sm:$0xff]  ;;  %v185_v37 = vld [vmem:[#allocation7 + $0x10] sm:$0xff] }
  0x41   :  { %268 = vmatpush1.msra.mxu1 %v205_v17  ;;  %v184_v38 = vld [vmem:[#allocation7 + $0x8] sm:$0xff]  ;;  %v183_v39 = vld [vmem:[#allocation7] sm:$0xff]  ;;  %v246_v40 = vld [vmem:[#allocation7 + $0x1f8] sm:$0xff] }
  0x42   :  { %269 = vmatprep.subr.mxu1 %v204_v18  ;;  %v245_v41 = vld [vmem:[#allocation7 + $0x1f0] sm:$0xff]  ;;  %v244_v42 = vld [vmem:[#allocation7 + $0x1e8] sm:$0xff]  ;;  %v243_v43 = vld [vmem:[#allocation7 + $0x1e0] sm:$0xff] }
  0x43   :  { %270 = vmatpush1.msra.mxu1 %v203_v19  ;;  %v242_v44 = vld [vmem:[#allocation7 + $0x1d8] sm:$0xff]  ;;  %v241_v45 = vld [vmem:[#allocation7 + $0x1d0] sm:$0xff]  ;;  %v240_v46 = vld [vmem:[#allocation7 + $0x1c8] sm:$0xff] }
  0x44   :  { %271 = vmatprep.subr.mxu1 %v202_v20  ;;  %v239_v47 = vld [vmem:[#allocation7 + $0x1c0] sm:$0xff]  ;;  %v238_v48 = vld [vmem:[#allocation7 + $0x1b8] sm:$0xff]  ;;  %v237_v49 = vld [vmem:[#allocation7 + $0x1b0] sm:$0xff] }
  0x45   :  { %272 = vmatpush1.msra.mxu1 %v201_v21  ;;  %v236_v50 = vld [vmem:[#allocation7 + $0x1a8] sm:$0xff]  ;;  %v235_v51 = vld [vmem:[#allocation7 + $0x1a0] sm:$0xff]  ;;  %v234_v52 = vld [vmem:[#allocation7 + $0x198] sm:$0xff] }
  0x46   :  { %273 = vmatprep.subr.mxu1 %v200_v22  ;;  %v233_v53 = vld [vmem:[#allocation7 + $0x190] sm:$0xff]  ;;  %v232_v54 = vld [vmem:[#allocation7 + $0x188] sm:$0xff]  ;;  %v231_v55 = vld [vmem:[#allocation7 + $0x180] sm:$0xff] }
  0x47   :  { %274 = vmatpush1.msra.mxu1 %v199_v23  ;;  %v230_v56 = vld [vmem:[#allocation7 + $0x178] sm:$0xff]  ;;  %v229_v57 = vld [vmem:[#allocation7 + $0x170] sm:$0xff]  ;;  %v228_v58 = vld [vmem:[#allocation7 + $0x168] sm:$0xff] }
  0x48   :  { %275 = vmatprep.subr.mxu1 %v198_v24  ;;  %v227_v59 = vld [vmem:[#allocation7 + $0x160] sm:$0xff]  ;;  %v226_v60 = vld [vmem:[#allocation7 + $0x158] sm:$0xff]  ;;  %v225_v61 = vld [vmem:[#allocation7 + $0x150] sm:$0xff] }
  0x49   :  { %276 = vmatpush1.msra.mxu1 %v197_v25  ;;  %v224_v62 = vld [vmem:[#allocation7 + $0x148] sm:$0xff]  ;;  %v223_v63 = vld [vmem:[#allocation7 + $0x140] sm:$0xff]  ;;  %v222_v0 = vld [vmem:[#allocation7 + $0x138] sm:$0xff] }
  0x4a   :  { %277 = vmatprep.subr.mxu1 %v196_v26  ;;  %v221_v1 = vld [vmem:[#allocation7 + $0x130] sm:$0xff]  ;;  %v220_v2 = vld [vmem:[#allocation7 + $0x128] sm:$0xff]  ;;  %v219_v3 = vld [vmem:[#allocation7 + $0x120] sm:$0xff] }
  0x4b   :  { %278 = vmatpush1.msra.mxu1 %v195_v27  ;;  %v218_v4 = vld [vmem:[#allocation7 + $0x118] sm:$0xff]  ;;  %v217_v5 = vld [vmem:[#allocation7 + $0x110] sm:$0xff]  ;;  %v216_v6 = vld [vmem:[#allocation7 + $0x108] sm:$0xff] }
  0x4c   :  { %279 = vmatprep.subr.mxu1 %v194_v28  ;;  %v215_v7 = vld [vmem:[#allocation7 + $0x100] sm:$0xff]  ;;  %v363_v8 = vld [vmem:[#allocation8 + $0xf8] sm:$0xff]  ;;  %v362_v10 = vld [vmem:[#allocation8 + $0xf0] sm:$0xff] }
  0x4d   :  { %280 = vmatpush1.msra.mxu1 %v193_v29  ;;  %v347_v9 = vld [vmem:[#allocation8 + $0x78] sm:$0xff]  ;;  %464 = vmatprep.subr.mxu0 %v363_v8  ;;  %v346_v11 = vld [vmem:[#allocation8 + $0x70] sm:$0xff]  ;;  %v361_v12 = vld [vmem:[#allocation8 + $0xe8] sm:$0xff] }
  0x4e   :  { %281 = vmatprep.subr.mxu1 %v192_v30  ;;  %465 = vmatpush3.msra.mxu0 %v347_v9  ;;  %v345_v13 = vld [vmem:[#allocation8 + $0x68] sm:$0xff]  ;;  %v360_v14 = vld [vmem:[#allocation8 + $0xe0] sm:$0xff]  ;;  %v359_v16 = vld [vmem:[#allocation8 + $0xd8] sm:$0xff] }
  0x4f   :  { %282 = vmatpush1.msra.mxu1 %v191_v31  ;;  %466 = vmatprep.subr.mxu0 %v362_v10  ;;  %v344_v15 = vld [vmem:[#allocation8 + $0x60] sm:$0xff]  ;;  %v343_v17 = vld [vmem:[#allocation8 + $0x58] sm:$0xff]  ;;  %v358_v18 = vld [vmem:[#allocation8 + $0xd0] sm:$0xff] }
  0x50   :  { %283 = vmatprep.subr.mxu1 %v190_v32  ;;  %467 = vmatpush3.msra.mxu0 %v346_v11  ;;  %v342_v19 = vld [vmem:[#allocation8 + $0x50] sm:$0xff]  ;;  %v357_v20 = vld [vmem:[#allocation8 + $0xc8] sm:$0xff]  ;;  %v356_v22 = vld [vmem:[#allocation8 + $0xc0] sm:$0xff]  ;;  %v89_v32 = vlaneseq }
  0x51   :  { %284 = vmatpush1.msra.mxu1 %v189_v33  ;;  %468 = vmatprep.subr.mxu0 %v361_v12  ;;  %v341_v21 = vld [vmem:[#allocation8 + $0x48] sm:$0xff]  ;;  %v340_v23 = vld [vmem:[#allocation8 + $0x40] sm:$0xff]  ;;  %v355_v24 = vld [vmem:[#allocation8 + $0xb8] sm:$0xff] }
  0x52   :  { %285 = vmatprep.subr.mxu1 %v188_v34  ;;  %469 = vmatpush3.msra.mxu0 %v345_v13  ;;  %v339_v25 = vld [vmem:[#allocation8 + $0x38] sm:$0xff]  ;;  %v354_v26 = vld [vmem:[#allocation8 + $0xb0] sm:$0xff]  ;;  %v353_v28 = vld [vmem:[#allocation8 + $0xa8] sm:$0xff]  ;;  %v90_v33 = vshrl.u32 %v89_v32, 7 }
  0x53   :  { %286 = vmatpush1.msra.mxu1 %v187_v35  ;;  %470 = vmatprep.subr.mxu0 %v360_v14  ;;  %v338_v27 = vld [vmem:[#allocation8 + $0x30] sm:$0xff]  ;;  %v337_v29 = vld [vmem:[#allocation8 + $0x28] sm:$0xff]  ;;  %v352_v30 = vld [vmem:[#allocation8 + $0xa0] sm:$0xff] }
  0x54   :  { %287 = vmatprep.subr.mxu1 %v186_v36  ;;  %471 = vmatpush3.msra.mxu0 %v344_v15  ;;  %v336_v31 = vld [vmem:[#allocation8 + $0x20] sm:$0xff]  ;;  %v91_v34 = vsub.s32 0, %v90_v33  ;;  %v87_v35 = vld [vmem:[%s695_s2] sm:$0x3]  ;;  %v95_v36 = vsub.s32 1, %v90_v33 }
  0x55   :  { %288 = vmatpush1.msra.mxu1 %v185_v37  ;;  %472 = vmatprep.subr.mxu0 %v359_v16 }
  0x56   :  { %289 = vmatprep.subr.mxu1 %v184_v38  ;;  %473 = vmatpush3.msra.mxu0 %v343_v17  ;;  %v92_v37 = vrot.slane %v87_v35, %v91_v34  ;;  %v96_v38 = vrot.slane %v87_v35, %v95_v36 }
  0x57   :  { %290 = vmatpush1.msra.mxu1 %v183_v39  ;;  %474 = vmatprep.subr.mxu0 %v358_v18 }
  0x58   :  { %291 = vmatprep.subr.mxu1 %v246_v40  ;;  %475 = vmatpush3.msra.mxu0 %v342_v19 }
  0x59   :  { %292 = vmatpush2.msra.mxu1 %v245_v41  ;;  %476 = vmatprep.subr.mxu0 %v357_v20 }
  0x5a   :  { %293 = vmatprep.subr.mxu1 %v244_v42  ;;  %477 = vmatpush3.msra.mxu0 %v341_v21 }
  0x5b   :  { %294 = vmatpush2.msra.mxu1 %v243_v43  ;;  %478 = vmatprep.subr.mxu0 %v356_v22 }
  0x5c   :  { %295 = vmatprep.subr.mxu1 %v242_v44  ;;  %479 = vmatpush3.msra.mxu0 %v340_v23 }
  0x5d   :  { %296 = vmatpush2.msra.mxu1 %v241_v45  ;;  %480 = vmatprep.subr.mxu0 %v355_v24  ;;  %v351_v45 = vld [vmem:[#allocation8 + $0x98] sm:$0xff] }
  0x5e   :  { %297 = vmatprep.subr.mxu1 %v240_v46  ;;  %481 = vmatpush3.msra.mxu0 %v339_v25  ;;  %v335_v46 = vld [vmem:[#allocation8 + $0x18] sm:$0xff] }
  0x5f   :  { %298 = vmatpush2.msra.mxu1 %v239_v47  ;;  %482 = vmatprep.subr.mxu0 %v354_v26  ;;  %v350_v47 = vld [vmem:[#allocation8 + $0x90] sm:$0xff] }
  0x60   :  { %299 = vmatprep.subr.mxu1 %v238_v48  ;;  %483 = vmatpush3.msra.mxu0 %v338_v27  ;;  %v334_v48 = vld [vmem:[#allocation8 + $0x10] sm:$0xff] }
  0x61   :  { %300 = vmatpush2.msra.mxu1 %v237_v49  ;;  %484 = vmatprep.subr.mxu0 %v353_v28  ;;  %v349_v49 = vld [vmem:[#allocation8 + $0x88] sm:$0xff] }
  0x62   :  { %301 = vmatprep.subr.mxu1 %v236_v50  ;;  %485 = vmatpush3.msra.mxu0 %v337_v29  ;;  %v333_v50 = vld [vmem:[#allocation8 + $0x8] sm:$0xff] }
  0x63   :  { %302 = vmatpush2.msra.mxu1 %v235_v51  ;;  %486 = vmatprep.subr.mxu0 %v352_v30  ;;  %v348_v51 = vld [vmem:[#allocation8 + $0x80] sm:$0xff] }
  0x64   :  { %303 = vmatprep.subr.mxu1 %v234_v52  ;;  %487 = vmatpush3.msra.mxu0 %v336_v31  ;;  %v332_v52 = vld [vmem:[#allocation8] sm:$0xff] }
  0x65   :  { %304 = vmatpush2.msra.mxu1 %v233_v53  ;;  %488 = vmatprep.subr.mxu0 %v351_v45  ;;  %v247_v53 = vld [vmem:[%s697_s4] sm:$0x3]  ;;  %s628_s4 = smov [#allocation10]  }
  0x66   :  { %305 = vmatprep.subr.mxu1 %v232_v54  ;;  %489 = vmatpush3.msra.mxu0 %v335_v46  ;;  %v252_v54 = vrot.slane %v247_v53, %v91_v34  ;;  %s449_s26 = sshll.u32 %s628_s4, 4  ;;  %s450_s26 = int_to_ptr.vmem [resolvable:$true] %s449_s26 }
  0x67   :  { %306 = vmatpush2.msra.mxu1 %v231_v55  ;;  %490 = vmatprep.subr.mxu0 %v350_v47  ;;  %v256_v55 = vrot.slane %v247_v53, %v95_v36  ;;  %s591_s27 = scalar_lea.vmem %s450_s26, 128  ;;  %p596_p7 = scmp.lt.s32.totalorder %s450_s26, %s450_s26 }
  0x68   :  { %307 = vmatprep.subr.mxu1 %v230_v56  ;;  %491 = vmatpush3.msra.mxu0 %v334_v48  ;;  %p592_p6 = scmp.ne.s32.totalorder %s450_s26, %s591_s27  ;;  %p597_p8 = scmp.lt.s32.totalorder %s591_s27, %s591_s27 }
  0x69   :  { %308 = vmatpush2.msra.mxu1 %v229_v57  ;;  %492 = vmatprep.subr.mxu0 %v349_v49 }
  0x6a   :  { %309 = vmatprep.subr.mxu1 %v228_v58  ;;  %493 = vmatpush3.msra.mxu0 %v333_v50  ;;  %p598_p9 = por %p597_p8, %p596_p7 }
  0x6b   :  { %310 = vmatpush2.msra.mxu1 %v227_v59  ;;  %494 = vmatprep.subr.mxu0 %v348_v51 }
  0x6c   :  { %311 = vmatprep.subr.mxu1 %v226_v60  ;;  %495 = vmatpush3.msra.mxu0 %v332_v52  ;;  %p599_p10 = pnand %p598_p9, %p592_p6 }
  0x6d   :  { %312 = vmatpush2.msra.mxu1 %v225_v61 }
  0x6e   :  { %313 = vmatprep.subr.mxu1 %v224_v62 }
  0x6f   :  { %314 = vmatpush2.msra.mxu1 %v223_v63  ;;  %v463_v63 = vld [vmem:[%s699_s6] ss:$0 sm:$0xff] }
  0x70   :  { %315 = vmatprep.subr.mxu1 %v222_v0 }
  0x71   :  { %316 = vmatpush2.msra.mxu1 %v221_v1 }
  0x72   :  { %317 = vmatprep.subr.mxu1 %v220_v2 }
  0x73   :  { %318 = vmatpush2.msra.mxu1 %v219_v3 }
  0x74   :  { %319 = vmatprep.subr.mxu1 %v218_v4 }
  0x75   :  { %320 = vmatpush2.msra.mxu1 %v217_v5 }
  0x76   :  { %321 = vmatprep.subr.mxu1 %v216_v6 }
  0x77   :  { %322 = vmatpush2.msra.mxu1 %v215_v7 }
  0xfb   :  { %v176_v39 = vpop.f32.mrf.mxu0 }
  0xfc   :  { %v177_v40 = vadd.f32 %v176_v39, %v92_v37 }
  0xfd   :  { %v178_v41 = vpop.f32.mrf.mxu0 }
  0xfe   :  { %v179_v42 = vadd.f32 %v178_v41, %v96_v38  ;;  %v181_v44 = vmax.f32 %v177_v40, 0.0 }
 0x100   :  { %v182_v43 = vmax.f32 %v179_v42, 0.0 }
 0x102   :  { %323 = vmatprep.mubr.f32.mxu1 %v182_v43 }
 0x103   :  { %324 = vmatmul.mubr.f32.vlgmr.msra.gmra.mxu1 %v181_v44 }
 0x1c3   :  { %v325_v56 = vpop.f32.mrf.mxu1 }
 0x1c4   :  { %v326_v57 = vadd.f32 %v325_v56, %v252_v54 }
 0x1c5   :  { %v327_v58 = vpop.f32.mrf.mxu1 }
 0x1c6   :  { %v328_v59 = vadd.f32 %v327_v58, %v256_v55  ;;  %v330_v61 = vmax.f32 %v326_v57, 0.0 }
 0x1c8   :  { %v331_v60 = vmax.f32 %v328_v59, 0.0 }
 0x1ca   :  { %435 = vmatprep.mubr.f32.mxu0 %v331_v60 }
 0x1cb   :  { %436 = vmatmul.mubr.f32.vlgmr.msra.gmra.mxu0 %v330_v61 }
 0x28b   :  { %v496_v62 = vpop.f32.mrf.mxu0 }
 0x28d   :  { %v497_v0 = vpop.f32.mrf.mxu0 }
 0x28e   :  { %v498_v1 = vadd.f32 %v497_v0, %v496_v62 }
 0x290   :  { %v438_v2 = vadd.f32 %v498_v1, %v463_v63 }
 0x292   :  { %509 = vtanh.f32 %v438_v2 }
 0x29f   :  { %v510_v3 = vpop.eup %509 }
 0x2a0   :  { %442 = vst [vmem:[#allocation10] sm:$0xff] %v510_v3 }
 0x2a1   :  { %602 = shalt.err (!%p599_p10)
}
 0x2a2   :  { %452 = dma.vmem_to_hbm [thread:$0]  %s450_s26, 128, %s700_s7, [#allocation4]  }
 0x2a3   :  { %617 = dma.done.wait [#allocation4], 128  }
 0x2a4   :  { %618 = vsyncadd [#allocation4], 4294967168 }
 0x2a5   :  { %456 = vsyncpa [#allocation3], 1 }
 0x2a6   :  { %457 = vsyncpa [#allocation6], 1 }
 0x2a7   :  { %458 = vsyncpa [#allocation9], 1 }
 0x2a8   :  { %459 = vsyncpa [#allocation4], 1 }

</bundles_post_ra>
